<compile_context>
chip_gen: v5e
topology: v5e:2x2
jax: 0.10.0
libtpu: 0.0.40
codegen_flags: <defaults>
</compile_context>

<pallas_src>
import functools
import math

import jax
import jax.numpy as jnp
from jax.experimental import pallas as pl
from jax.experimental.pallas import tpu as pltpu


def _fused_conv1d_block_kernel(x_ref, w1_ref, b1_ref, w2_ref, b2_ref, o_ref,
                               xp_ref, col1_ref, col2_ref, *,
                               C_in, C_out, L, K1, K2, pad1, pad2,
                               L1, L2, CP1, CP2, LP):
    # x_ref:  (1, C_in, L)        one batch element
    # w1_ref: (C_out, K1*CP1)     tap-major, C_in zero-padded to CP1, he1 folded in
    # b1_ref: (C_out, 1)          he1 folded in
    # w2_ref: (C_out, K2*CP2), b2_ref: (C_out, 1)
    # o_ref:  (1, C_out, LP)      lane-dense padded output (valid columns [0, L2))
    # scratch: xp (CP1, LP), col1 (K1*CP1, LP), col2 (K2*CP2, LP), all f32

    def roll_l(v, shift):
        s = shift % LP
        return v if s == 0 else pltpu.roll(v, s, axis=1)

    # ---- stage 1: zero-padded x -> im2col (XLU rolls) -> one MXU matmul ------
    xp_ref[...] = jnp.zeros_like(xp_ref)          # zero halo rows / lanes
    xp_ref[:C_in, :L] = x_ref[0]                  # x at rows [0,C_in), lanes [0,L)
    xp = xp_ref[...]
    col1_ref[...] = jnp.zeros_like(col1_ref)
    for k in range(K1):                           # col1[k*CP1+c, j] = x_pad1[c, j+k]
        col1_ref[k * CP1:(k + 1) * CP1, :] = roll_l(xp, pad1 - k)
    y1 = jnp.dot(w1_ref[...], col1_ref[...], preferred_element_type=jnp.float32)
    y1 = y1 + b1_ref[...]                         # (conv + b) * he, he pre-folded
    y1 = jnp.where(y1 >= 0, y1, 0.2 * y1)         # LeakyReLU(0.2)

    lanes = jax.lax.broadcasted_iota(jnp.int32, (C_out, LP), 1)
    y1 = jnp.where(lanes < L1, y1, 0.0)           # keep valid columns, zero the rest
    yp = roll_l(y1, pad2)                         # place stage-2 zero halo (in-vreg)

    # ---- stage 2: same pattern, intermediate never touches HBM ---------------
    col2_ref[...] = jnp.zeros_like(col2_ref)
    for k in range(K2):                           # col2[k*CP2+c, j] = y1_pad2[c, j+k]
        col2_ref[k * CP2:k * CP2 + C_out, :] = roll_l(yp, -k)
    y2 = jnp.dot(w2_ref[...], col2_ref[...], preferred_element_type=jnp.float32)
    y2 = y2 + b2_ref[...]
    y2 = jnp.where(y2 >= 0, y2, 0.2 * y2)         # LeakyReLU(0.2)
    y2 = jnp.where(lanes < L2, y2, 0.0)           # deterministic padded tail
    o_ref[0] = y2.astype(o_ref.dtype)


def _round_up(v, m):
    return (v + m - 1) // m * m


def _pack_weight(w, scale, cp):
    """(C_out, C_in, K) -> (C_out, K*cp): tap-major, C_in zero-padded to cp, *scale."""
    C_out, C_in, K = w.shape
    wt = jnp.transpose(w, (0, 2, 1)).astype(jnp.float32) * scale   # (C_out, K, C_in)
    wt = jnp.pad(wt, ((0, 0), (0, 0), (0, cp - C_in)))
    return wt.reshape(C_out, K * cp)


@functools.partial(jax.jit, static_argnums=(5, 6))
def conv1d_block(x, w1, b1, w2, b2, pad1, pad2):
    """Conv1DBlock.forward: two equalized conv1d + LeakyReLU(0.2), fused in one kernel."""
    N, C_in, L = x.shape
    C_out, _, K1 = w1.shape
    _, _, K2 = w2.shape
    L1 = L + 2 * pad1 - K1 + 1
    L2 = L1 + 2 * pad2 - K2 + 1
    he1 = math.sqrt(2.0 / (C_in * K1))    # getLayerNormalizationFactor, lrMul=1
    he2 = math.sqrt(2.0 / (C_out * K2))
    CP1 = _round_up(C_in, 8)              # sublane-aligned im2col row groups
    CP2 = _round_up(C_out, 8)
    LP = _round_up(max(L + pad1, L1 + 2 * pad2, L2), 128)   # lane-dense width

    w1f = _pack_weight(w1, he1, CP1)
    w2f = _pack_weight(w2, he2, CP2)
    b1s = (b1.astype(jnp.float32) * he1).reshape(C_out, 1)
    b2s = (b2.astype(jnp.float32) * he2).reshape(C_out, 1)
    x = x.astype(jnp.float32)

    kernel = functools.partial(
        _fused_conv1d_block_kernel,
        C_in=C_in, C_out=C_out, L=L, K1=K1, K2=K2, pad1=pad1, pad2=pad2,
        L1=L1, L2=L2, CP1=CP1, CP2=CP2, LP=LP)

    out_padded = pl.pallas_call(
        kernel,
        out_shape=jax.ShapeDtypeStruct((N, C_out, LP), jnp.float32),
        grid_spec=pltpu.PrefetchScalarGridSpec(
            num_scalar_prefetch=0,
            grid=(N,),
            in_specs=[
                pl.BlockSpec((1, C_in, L), lambda n: (n, 0, 0)),
                pl.BlockSpec((C_out, K1 * CP1), lambda n: (0, 0)),
                pl.BlockSpec((C_out, 1), lambda n: (0, 0)),
                pl.BlockSpec((C_out, K2 * CP2), lambda n: (0, 0)),
                pl.BlockSpec((C_out, 1), lambda n: (0, 0)),
            ],
            out_specs=pl.BlockSpec((1, C_out, LP), lambda n: (n, 0, 0)),
            scratch_shapes=[
                pltpu.VMEM((CP1, LP), jnp.float32),        # zero-padded x tile
                pltpu.VMEM((K1 * CP1, LP), jnp.float32),   # stage-1 im2col
                pltpu.VMEM((K2 * CP2, LP), jnp.float32),   # stage-2 im2col
            ],
        ),
        compiler_params=pltpu.CompilerParams(dimension_semantics=("parallel",)),
    )(x, w1f, b1s, w2f, b2s)
    return out_padded[:, :, :L2]


def _reference(x, w1, b1, w2, b2, pad1, pad2):
    """Pure-JAX reference using lax.conv_general_dilated for validation."""
    def stage(x, w, b, pad):
        C_in, K = w.shape[1], w.shape[2]
        scale = math.sqrt(2.0 / (C_in * K))
        y = jax.lax.conv_general_dilated(
            x, w, window_strides=(1,), padding=[(pad, pad)],
            dimension_numbers=("NCH", "OIH", "NCH"))
        y = (y + b[None, :, None]) * scale
        return jnp.where(y >= 0, y, 0.2 * y)
    return stage(stage(x, w1, b1, pad1), w2, b2, pad2)


if __name__ == "__main__":
    # Module config (small, consistent with Conv1DBlock): in=4, out=8, K=3, pad=1
    N, C_IN, C_OUT, L = 2, 4, 8, 16
    K1, PAD1 = 3, 1
    K2, PAD2 = 3, 1

    key = jax.random.PRNGKey(0)
    kx, kw1, kw2 = jax.random.split(key, 3)
    x = jax.random.normal(kx, (N, C_IN, L), dtype=jnp.float32)
    # EqualizedConv1d init: weight ~ N(0,1), bias = 0
    w1 = jax.random.normal(kw1, (C_OUT, C_IN, K1), dtype=jnp.float32)
    b1 = jnp.zeros((C_OUT,), dtype=jnp.float32)
    w2 = jax.random.normal(kw2, (C_OUT, C_OUT, K2), dtype=jnp.float32)
    b2 = jnp.zeros((C_OUT,), dtype=jnp.float32)

    out = conv1d_block(x, w1, b1, w2, b2, PAD1, PAD2)
    out = jax.block_until_ready(out)

    ref = _reference(x, w1, b1, w2, b2, PAD1, PAD2)
    assert out.shape == ref.shape, (out.shape, ref.shape)
    assert jnp.allclose(out, ref, atol=1e-4, rtol=1e-4), "mismatch vs reference"

    print("KERNEL_OK")
</pallas_src>

<mosaic_0001>
module attributes {stable_mosaic.version = 11 : i64} {
  func.func @_fused_conv1d_block_kernel(%arg0: i32, %arg1: memref<1x4x16xf32, #tpu.memory_space<vmem>>, %arg2: memref<8x24xf32, #tpu.memory_space<vmem>>, %arg3: memref<8x1xf32, #tpu.memory_space<vmem>>, %arg4: memref<8x24xf32, #tpu.memory_space<vmem>>, %arg5: memref<8x1xf32, #tpu.memory_space<vmem>>, %arg6: memref<1x8x128xf32, #tpu.memory_space<vmem>>, %arg7: memref<8x128xf32, #tpu.memory_space<vmem>>, %arg8: memref<24x128xf32, #tpu.memory_space<vmem>>, %arg9: memref<24x128xf32, #tpu.memory_space<vmem>>) attributes {dimension_semantics = [#tpu.dimension_semantics<parallel>], iteration_bounds = array<i64: 2>, scalar_prefetch = 0 : i64, scratch_operands = 3 : i64, tpu.core_type = #tpu.core_type<tc>, window_params = [{transform_indices = @transform_0, window_bounds = array<i64: 1, 4, 16>}, {pipeline_mode = #tpu.pipeline_mode<synchronous>, transform_indices = @transform_1, window_bounds = array<i64: 8, 24>}, {pipeline_mode = #tpu.pipeline_mode<synchronous>, transform_indices = @transform_2, window_bounds = array<i64: 8, 1>}, {pipeline_mode = #tpu.pipeline_mode<synchronous>, transform_indices = @transform_3, window_bounds = array<i64: 8, 24>}, {pipeline_mode = #tpu.pipeline_mode<synchronous>, transform_indices = @transform_4, window_bounds = array<i64: 8, 1>}, {transform_indices = @transform_5, window_bounds = array<i64: 1, 8, 128>}]} {
    %cst = arith.constant 0.000000e+00 : f32
    %0 = vector.broadcast %cst : f32 to vector<8x128xf32>
    %c0 = arith.constant 0 : index
    %c0_0 = arith.constant 0 : index
    %1 = vector.load %arg7[%c0, %c0_0] : memref<8x128xf32, #tpu.memory_space<vmem>>, vector<8x128xf32>
    tpu.vector_store %arg7[%c0, %c0_0], %0 {strides = array<i32>} : memref<8x128xf32, #tpu.memory_space<vmem>>, vector<8x128xf32>,
    %c0_1 = arith.constant 0 : index
    %c0_2 = arith.constant 0 : index
    %c0_3 = arith.constant 0 : index
    %2 = vector.load %arg1[%c0_1, %c0_2, %c0_3] : memref<1x4x16xf32, #tpu.memory_space<vmem>>, vector<1x4x16xf32>
    %3 = vector.shape_cast %2 : vector<1x4x16xf32> to vector<4x16xf32>
    %c0_4 = arith.constant 0 : index
    %c0_5 = arith.constant 0 : index
    %4 = vector.load %arg7[%c0_4, %c0_5] : memref<8x128xf32, #tpu.memory_space<vmem>>, vector<4x16xf32>
    tpu.vector_store %arg7[%c0_4, %c0_5], %3 {strides = array<i32>} : memref<8x128xf32, #tpu.memory_space<vmem>>, vector<4x16xf32>,
    %c0_6 = arith.constant 0 : index
    %c0_7 = arith.constant 0 : index
    %5 = vector.load %arg7[%c0_6, %c0_7] : memref<8x128xf32, #tpu.memory_space<vmem>>, vector<8x128xf32>
    %cst_8 = arith.constant 0.000000e+00 : f32
    %6 = vector.broadcast %cst_8 : f32 to vector<24x128xf32>
    %c0_9 = arith.constant 0 : index
    %c0_10 = arith.constant 0 : index
    %7 = vector.load %arg8[%c0_9, %c0_10] : memref<24x128xf32, #tpu.memory_space<vmem>>, vector<24x128xf32>
    tpu.vector_store %arg8[%c0_9, %c0_10], %6 {strides = array<i32>} : memref<24x128xf32, #tpu.memory_space<vmem>>, vector<24x128xf32>,
    %c1_i32 = arith.constant 1 : i32
    %8 = tpu.dynamic_rotate %5 by %c1_i32 dim 1 : vector<8x128xf32>, i32 -> vector<8x128xf32>
    %c0_11 = arith.constant 0 : index
    %c0_12 = arith.constant 0 : index
    %9 = vector.load %arg8[%c0_11, %c0_12] : memref<24x128xf32, #tpu.memory_space<vmem>>, vector<8x128xf32>
    tpu.vector_store %arg8[%c0_11, %c0_12], %8 {strides = array<i32>} : memref<24x128xf32, #tpu.memory_space<vmem>>, vector<8x128xf32>,
    %c8 = arith.constant 8 : index
    %c0_13 = arith.constant 0 : index
    %10 = vector.load %arg8[%c8, %c0_13] : memref<24x128xf32, #tpu.memory_space<vmem>>, vector<8x128xf32>
    tpu.vector_store %arg8[%c8, %c0_13], %5 {strides = array<i32>} : memref<24x128xf32, #tpu.memory_space<vmem>>, vector<8x128xf32>,
    %c127_i32 = arith.constant 127 : i32
    %11 = tpu.dynamic_rotate %5 by %c127_i32 dim 1 : vector<8x128xf32>, i32 -> vector<8x128xf32>
    %c16 = arith.constant 16 : index
    %c0_14 = arith.constant 0 : index
    %12 = vector.load %arg8[%c16, %c0_14] : memref<24x128xf32, #tpu.memory_space<vmem>>, vector<8x128xf32>
    tpu.vector_store %arg8[%c16, %c0_14], %11 {strides = array<i32>} : memref<24x128xf32, #tpu.memory_space<vmem>>, vector<8x128xf32>,
    %c0_15 = arith.constant 0 : index
    %c0_16 = arith.constant 0 : index
    %13 = vector.load %arg2[%c0_15, %c0_16] : memref<8x24xf32, #tpu.memory_space<vmem>>, vector<8x24xf32>
    %c0_17 = arith.constant 0 : index
    %c0_18 = arith.constant 0 : index
    %14 = vector.load %arg8[%c0_17, %c0_18] : memref<24x128xf32, #tpu.memory_space<vmem>>, vector<24x128xf32>
    %cst_19 = arith.constant dense<0.000000e+00> : vector<8x128xf32>
    %15 = tpu.matmul %13, %14, %cst_19 {dimension_numbers = #tpu.dot_dimension_numbers<[1], [0], [0], [1], [0, 0, 1, 1], [], []>} : vector<8x24xf32>, vector<24x128xf32>, vector<8x128xf32> -> vector<8x128xf32>
    %c0_20 = arith.constant 0 : index
    %c0_21 = arith.constant 0 : index
    %16 = vector.load %arg3[%c0_20, %c0_21] : memref<8x1xf32, #tpu.memory_space<vmem>>, vector<8x1xf32>
    %17 = vector.broadcast %16 : vector<8x1xf32> to vector<8x128xf32>
    %18 = arith.addf %15, %17 : vector<8x128xf32>
    %cst_22 = arith.constant 0.000000e+00 : f32
    %19 = vector.broadcast %cst_22 : f32 to vector<8x128xf32>
    %20 = arith.cmpf oge, %18, %19 : vector<8x128xf32>
    %cst_23 = arith.constant 2.000000e-01 : f32
    %21 = vector.broadcast %cst_23 : f32 to vector<8x128xf32>
    %22 = arith.mulf %21, %18 : vector<8x128xf32>
    %23 = arith.select %20, %18, %22 : vector<8x128xi1>, vector<8x128xf32>
    %24 = tpu.iota {dimensions = array<i32: 1>} : vector<8x128xi32>
    %c16_i32 = arith.constant 16 : i32
    %25 = vector.broadcast %c16_i32 : i32 to vector<8x128xi32>
    %26 = arith.cmpi slt, %24, %25 : vector<8x128xi32>
    %cst_24 = arith.constant 0.000000e+00 : f32
    %27 = vector.broadcast %cst_24 : f32 to vector<8x128xf32>
    %28 = arith.select %26, %23, %27 : vector<8x128xi1>, vector<8x128xf32>
    %c1_i32_25 = arith.constant 1 : i32
    %29 = tpu.dynamic_rotate %28 by %c1_i32_25 dim 1 : vector<8x128xf32>, i32 -> vector<8x128xf32>
    %cst_26 = arith.constant 0.000000e+00 : f32
    %30 = vector.broadcast %cst_26 : f32 to vector<24x128xf32>
    %c0_27 = arith.constant 0 : index
    %c0_28 = arith.constant 0 : index
    %31 = vector.load %arg9[%c0_27, %c0_28] : memref<24x128xf32, #tpu.memory_space<vmem>>, vector<24x128xf32>
    tpu.vector_store %arg9[%c0_27, %c0_28], %30 {strides = array<i32>} : memref<24x128xf32, #tpu.memory_space<vmem>>, vector<24x128xf32>,
    %c0_29 = arith.constant 0 : index
    %c0_30 = arith.constant 0 : index
    %32 = vector.load %arg9[%c0_29, %c0_30] : memref<24x128xf32, #tpu.memory_space<vmem>>, vector<8x128xf32>
    tpu.vector_store %arg9[%c0_29, %c0_30], %29 {strides = array<i32>} : memref<24x128xf32, #tpu.memory_space<vmem>>, vector<8x128xf32>,
    %c127_i32_31 = arith.constant 127 : i32
    %33 = tpu.dynamic_rotate %29 by %c127_i32_31 dim 1 : vector<8x128xf32>, i32 -> vector<8x128xf32>
    %c8_32 = arith.constant 8 : index
    %c0_33 = arith.constant 0 : index
    %34 = vector.load %arg9[%c8_32, %c0_33] : memref<24x128xf32, #tpu.memory_space<vmem>>, vector<8x128xf32>
    tpu.vector_store %arg9[%c8_32, %c0_33], %33 {strides = array<i32>} : memref<24x128xf32, #tpu.memory_space<vmem>>, vector<8x128xf32>,
    %c126_i32 = arith.constant 126 : i32
    %35 = tpu.dynamic_rotate %29 by %c126_i32 dim 1 : vector<8x128xf32>, i32 -> vector<8x128xf32>
    %c16_34 = arith.constant 16 : index
    %c0_35 = arith.constant 0 : index
    %36 = vector.load %arg9[%c16_34, %c0_35] : memref<24x128xf32, #tpu.memory_space<vmem>>, vector<8x128xf32>
    tpu.vector_store %arg9[%c16_34, %c0_35], %35 {strides = array<i32>} : memref<24x128xf32, #tpu.memory_space<vmem>>, vector<8x128xf32>,
    %c0_36 = arith.constant 0 : index
    %c0_37 = arith.constant 0 : index
    %37 = vector.load %arg4[%c0_36, %c0_37] : memref<8x24xf32, #tpu.memory_space<vmem>>, vector<8x24xf32>
    %c0_38 = arith.constant 0 : index
    %c0_39 = arith.constant 0 : index
    %38 = vector.load %arg9[%c0_38, %c0_39] : memref<24x128xf32, #tpu.memory_space<vmem>>, vector<24x128xf32>
    %cst_40 = arith.constant dense<0.000000e+00> : vector<8x128xf32>
    %39 = tpu.matmul %37, %38, %cst_40 {dimension_numbers = #tpu.dot_dimension_numbers<[1], [0], [0], [1], [0, 0, 1, 1], [], []>} : vector<8x24xf32>, vector<24x128xf32>, vector<8x128xf32> -> vector<8x128xf32>
    %c0_41 = arith.constant 0 : index
    %c0_42 = arith.constant 0 : index
    %40 = vector.load %arg5[%c0_41, %c0_42] : memref<8x1xf32, #tpu.memory_space<vmem>>, vector<8x1xf32>
    %41 = vector.broadcast %40 : vector<8x1xf32> to vector<8x128xf32>
    %42 = arith.addf %39, %41 : vector<8x128xf32>
    %cst_43 = arith.constant 0.000000e+00 : f32
    %43 = vector.broadcast %cst_43 : f32 to vector<8x128xf32>
    %44 = arith.cmpf oge, %42, %43 : vector<8x128xf32>
    %cst_44 = arith.constant 2.000000e-01 : f32
    %45 = vector.broadcast %cst_44 : f32 to vector<8x128xf32>
    %46 = arith.mulf %45, %42 : vector<8x128xf32>
    %47 = arith.select %44, %42, %46 : vector<8x128xi1>, vector<8x128xf32>
    %c16_i32_45 = arith.constant 16 : i32
    %48 = vector.broadcast %c16_i32_45 : i32 to vector<8x128xi32>
    %49 = arith.cmpi slt, %24, %48 : vector<8x128xi32>
    %cst_46 = arith.constant 0.000000e+00 : f32
    %50 = vector.broadcast %cst_46 : f32 to vector<8x128xf32>
    %51 = arith.select %49, %47, %50 : vector<8x128xi1>, vector<8x128xf32>
    %c0_47 = arith.constant 0 : index
    %c0_48 = arith.constant 0 : index
    %c0_49 = arith.constant 0 : index
    %52 = vector.load %arg6[%c0_47, %c0_48, %c0_49] : memref<1x8x128xf32, #tpu.memory_space<vmem>>, vector<1x8x128xf32>
    %53 = vector.shape_cast %52 : vector<1x8x128xf32> to vector<8x128xf32>
    %54 = vector.shape_cast %51 : vector<8x128xf32> to vector<1x8x128xf32>
    tpu.vector_store %arg6[%c0_47, %c0_48, %c0_49], %54 {strides = array<i32>} : memref<1x8x128xf32, #tpu.memory_space<vmem>>, vector<1x8x128xf32>,
    return
  }
  func.func @transform_0(%arg0: i32) -> (i32, i32, i32) {
    %c0_i32 = arith.constant 0 : i32
    %c0_i32_0 = arith.constant 0 : i32
    %c0_i32_1 = arith.constant 0 : i32
    return %arg0, %c0_i32, %c0_i32_0 : i32, i32, i32
  }
  func.func @transform_1(%arg0: i32) -> (i32, i32) {
    %c0_i32 = arith.constant 0 : i32
    %c0_i32_0 = arith.constant 0 : i32
    %c0_i32_1 = arith.constant 0 : i32
    return %c0_i32, %c0_i32_0 : i32, i32
  }
  func.func @transform_2(%arg0: i32) -> (i32, i32) {
    %c0_i32 = arith.constant 0 : i32
    %c0_i32_0 = arith.constant 0 : i32
    %c0_i32_1 = arith.constant 0 : i32
    return %c0_i32, %c0_i32_0 : i32, i32
  }
  func.func @transform_3(%arg0: i32) -> (i32, i32) {
    %c0_i32 = arith.constant 0 : i32
    %c0_i32_0 = arith.constant 0 : i32
    %c0_i32_1 = arith.constant 0 : i32
    return %c0_i32, %c0_i32_0 : i32, i32
  }
  func.func @transform_4(%arg0: i32) -> (i32, i32) {
    %c0_i32 = arith.constant 0 : i32
    %c0_i32_0 = arith.constant 0 : i32
    %c0_i32_1 = arith.constant 0 : i32
    return %c0_i32, %c0_i32_0 : i32, i32
  }
  func.func @transform_5(%arg0: i32) -> (i32, i32, i32) {
    %c0_i32 = arith.constant 0 : i32
    %c0_i32_0 = arith.constant 0 : i32
    %c0_i32_1 = arith.constant 0 : i32
    return %arg0, %c0_i32, %c0_i32_0 : i32, i32, i32
  }
}

</mosaic_0001>

<bundles_post_ra>
// kernel: conv1d_block.1
= control target key start
LH: loop header
LB: loop body
LE: loop exit
PB: predicated region body
PF: predicated region fallthrough
CT: control target
= control target key end

     0   :  { %10 = vsyncpa [#allocation6], 0  ;;  %s661_s0 = inlined_call_operand.vmem [shape: f32[2,4,16], index: 0, kind: input, shape index: {}]   ;;  %s662_s1 = inlined_call_operand.vmem [shape: f32[8,24], index: 1, kind: input, shape index: {}]   ;;  %s663_s2 = inlined_call_operand.vmem [shape: f32[8,1], index: 2, kind: input, shape index: {}]   ;;  %s664_s3 = inlined_call_operand.vmem [shape: f32[8,24], index: 3, kind: input, shape index: {}]   ;;  %s665_s4 = inlined_call_operand.vmem [shape: f32[8,1], index: 4, kind: input, shape index: {}]   ;;  %s666_s5 = inlined_call_operand.hbm [shape: f32[2,8,128], index: 5, kind: output, shape index: {}]  }
   0x1   :  { %12 = vsyncpa [#allocation6 + $0x1], 0  ;;  %s558_s18 = smov 0   ;;  %s560_s19 = smov 0  }
   0x2   :  { %s562_s20 = smov 0   ;;  %s564_s21 = smov 0  }
   0x3 LB: > { %s579_s22 = sadd.s32 4294967295, %s521_s21   ;;  %s401_s23 = sadd.s32 4294967294, %s521_s21   ;;  %s521_s21 = sphi %s564_s21, %s672_s21   ;;  %s517_s20 = sphi %s562_s20, %s671_s20   ;;  %s513_s19 = sphi %s560_s19, %s670_s19   ;;  %s509_s18 = sphi %s558_s18, %s669_s18  }
   0x4   : > { %s583_s24 = sadd.s32 1, %s521_s21   ;;  %s135_s25 = sadd.s32 1, %s517_s20 }
   0x5   : > { %s132_s26 = ssub.s32 %s521_s21, %s583_s24  ;;  %p145_p0 = scmp.ne.s32.totalorder %s517_s20, %s513_s19 }
   0x6   : > { %p133_p1 = scmp.eq.s32.totalorder %s132_s26, 0  ;;  %p146_p2 = scmp.eq.s32.totalorder %s579_s22, 1 }
   0x7   : > { %p151_p3 = scmp.ne.s32.totalorder %s513_s19, %s509_s18  ;;  %p152_p4 = scmp.eq.s32.totalorder %s401_s23, 1 }
   0x8   : > { %s594_s27 = scalar_select %p133_p1, %s517_s20, %s135_s25  }
   0x9   : > { %p596_p5 = por %p146_p2, %p145_p0  ;;  %p600_p6 = por %p152_p4, %p151_p3 }
   0xa   : > { %p404_p7 = scmp.ge.s32.totalorder %s521_s21, 1  ;;  %p189_p8 = scmp.lt.s32.totalorder %s521_s21, 3 }
   0xc   : > { %p190_p9 = pnand %p404_p7, %p189_p8 }
   0xd   : > { %p216_p10 = scmp.lt.s32.totalorder (!%p190_p9), %s579_s22, 1  ;;  %s524_s10 = smov (!%p190_p9), 127  }
   0xe   : > { %193 = sbr.rel (%p190_p9) target bundleno = 640 (0x280), region = 40  ;;  %s525_s11 = smov (!%p190_p9), 1  }
   0xf   : > { %s527_s16 = smov (!%p190_p9), 126   ;;  %s410_s7 = sshll.u32 (!%p190_p9), %s579_s22, 3 }
  0x10   : > { %s479_s23 = scalar_lea.hbm (!%p190_p9), %s666_s5, 16 }
  0x13   : > { %v523_v0 = vmov 0.0   ;;  %s217_s30 = scalar_select %p216_p10, %s579_s22, 1  ;;  %vm222_vm0 = vcmask 125952   ;;  %v239_v3 = vld [vmem:[%s663_s2] sm:$0xff]  ;;  %v526_v4 = vmov 0   ;;  %vm245_vm1 = vcmask 195584  }
  0x14   : > { %220 = vst [vmem:[#allocation2] sm:$0xff] %v523_v0  ;;  %457 = vset.pattern.permute.xlu1 %v526_v4  ;;  %458 = vset.pattern.permute.xlu0 %v526_v4  ;;  %v235_v6 = vld [vmem:[%s662_s1] sm:$0xff]  ;;  %v272_v8 = vlaneseq }
  0x15   : > { %s406_s6 = sshll.u32 %s217_s30, 2  ;;  %242 = vperm.xlu1 %457, %v239_v3   ;;  %v292_v17 = vld [vmem:[%s665_s4] sm:$0xff]  ;;  %s213_s30 = sand.u32 1, %s513_s19  }
  0x16   : > { %s219_s9 = scalar_lea.vmem %s661_s0, %s406_s6  ;;  %v273_v10 = vand.u32 127, %v272_v8  ;;  %v288_v20 = vld [vmem:[%s664_s3] sm:$0xff]  ;;  %s405_s6 = sshll.u32 %s213_s30, 3 }
  0x17   : > { %v221_v1 = vld [vmem:[%s219_s9] sm:$0xf]  ;;  %s327_s22 = scalar_lea.sflag [#allocation6], %s213_s30 }
  0x18   : > { %223 = vst.msk [vmem:[#allocation2] sm:$0xf] %vm222_vm0, %v221_v1  ;;  %vm274_vm3 = vcmp.lt.s32.totalorder %v273_v10, 16 }
  0x1f   : > { %v224_v2 = vld [vmem:[#allocation2] sm:$0xff] }
  0x20   : > { %232 = vrot.lane.b32.xlu0 %v224_v2, %s524_s10 }
  0x28   : > { %228 = vrot.lane.b32.xlu0 %v224_v2, %s525_s11 }
  0x30   : > { %295 = vperm.xlu0 %458, %v292_v17  }
  0x87   : > { %v243_v9 = vpop.permute.xlu1 %242 }
  0x92   : > { %v233_v5 = vpop.permute.xlu0 %232 }
  0x93   : > { %262 = vmatpush.msra.mxu0 %v233_v5 }
  0x95   : > { %263 = vmatpush.msra.mxu0 %v224_v2 }
  0x9a   : > { %v229_v7 = vpop.permute.xlu0 %228 }
  0x9b   : > { %264 = vmatpush.msra.mxu0 %v229_v7 }
  0x9c   : > { %407 = vmatmul.msk.f32.vlgmr.msra.gmra.mxu0 %vm245_vm1, %v235_v6 }
  0xa2   : > { %v296_v21 = vpop.permute.xlu0 %295 }
 0x119   : > { %v266_v11 = vpop.f32.mrf.mxu0 }
 0x11a   : > { %v267_v12 = vadd.f32 %v266_v11, %v243_v9 }
 0x11c   : > { %v270_v13 = vmul.f32 0.2, %v267_v12  ;;  %vm269_vm2 = vcmp.ge.f32.partialorder %v267_v12, 0.0 }
 0x11e   : > { %v271_v14 = vsel %vm269_vm2, %v267_v12, %v270_v13 }
 0x11f   : > { %v275_v15 = vsel %vm274_vm3, %v271_v14, 0.0 }
 0x120   : > { %276 = vrot.lane.b32.xlu1 %v275_v15, %s525_s11  ;;  %s215_s11 = scalar_lea.vmem [#allocation5], %s405_s6 }
 0x121   : > { %s339_s12 = sshll.u32 %s215_s11, 4  ;;  %s340_s12 = int_to_ptr.vmem [resolvable:$true] %s339_s12 }
 0x192   : > { %v277_v16 = vpop.permute.xlu1 %276 }
 0x193   : > { %285 = vrot.lane.b32.xlu2 %v277_v16, %s527_s16 }
 0x19b   : > { %282 = vrot.lane.b32.xlu2 %v277_v16, %s524_s10  ;;  %s337_s10 = scalar_lea.hbm %s666_s5, %s410_s7 }
 0x19c   : > { %s341_s13 = sshll.u32 %s337_s10, 4  ;;  %s342_s13 = int_to_ptr.hbm [resolvable:$true] %s341_s13 }
 0x19d   : > { %s473_s14 = sshra.s32 %s342_s13, 4  ;;  %s474_s14 = int_to_ptr.hbm [resolvable:$true] %s473_s14 }
 0x19e   : > { %s475_s15 = scalar_lea.hbm %s474_s14, 8  ;;  %p480_p0 = scmp.lt.s32.totalorder %s474_s14, %s666_s5 }
 0x19f   : > { %p476_p11 = scmp.ne.s32.totalorder %s474_s14, %s475_s15  ;;  %p481_p1 = scmp.lt.s32.totalorder %s479_s23, %s475_s15 }
 0x1a1   : > { %p477_p12 = pnand %p476_p11, %p596_p5  ;;  %p482_p2 = por %p481_p1, %p480_p0 }
 0x1a3   : > { %p478_p13 = pneg %p477_p12 }
 0x1a5   : > { %p483_p3 = pnand %p482_p2, %p478_p13 }
 0x1ed   : > { %v286_v18 = vpop.permute.xlu2 %285 }
 0x1ee   : > { %314 = vmatpush.msra.mxu1 %v286_v18 }
 0x1f5   : > { %v283_v19 = vpop.permute.xlu2 %282 }
 0x1f6   : > { %315 = vmatpush.msra.mxu1 %v283_v19 }
 0x1f8   : > { %316 = vmatpush.msra.mxu1 %v277_v16 }
 0x1f9   : > { %408 = vmatmul.msk.f32.vlgmr.msra.gmra.mxu1 %vm245_vm1, %v288_v20 }
 0x276   : > { %v318_v22 = vpop.f32.mrf.mxu1 }
 0x277   : > { %v319_v23 = vadd.f32 %v318_v22, %v296_v21 }
 0x279   : > { %vm321_vm4 = vcmp.ge.f32.partialorder %v319_v23, 0.0  ;;  %v322_v24 = vmul.f32 0.2, %v319_v23 }
 0x27b   : > { %v323_v25 = vsel %vm321_vm4, %v319_v23, %v322_v24 }
 0x27c   : > { %v324_v26 = vsel %vm274_vm3, %v323_v25, 0.0 }
 0x27d   : > { %325 = vst [vmem:[%s215_s11] sm:$0xff] %v324_v26 }
 0x27e   : > { %486 = shalt.err (!%p483_p3)
}
 0x27f   : > { %413 = dma.vmem_to_hbm [thread:$0]  (%p596_p5), %s340_s12, 128, %s342_s13, %s327_s22  }
 0x280 PF: > { %p419_p4 = scmp.ge.s32.totalorder %s521_s21, 2  ;;  %s353_s30 = sand.u32 1, %s509_s18  }
 0x281   : > { %s354_s6 = scalar_lea.sflag [#allocation6], %s353_s30 }
 0x282   : > { %p416_p7 = pnand %p419_p4, %p600_p6 }
 0x284   : > { %p417_p8 = pneg %p416_p7 }
 0x286   : > { %504 = dma.done.wait (%p417_p8), %s354_s6, 128  }
 0x287   : > { %506 = vsyncadd (%p417_p8), %s354_s6, 4294967168  ;;  %p15_p9 = scmp.ge.s32.totalorder %s583_s24, 4   ;;  %s669_s18 = smov %s513_s19 }
 0x288   : > { %s670_s19 = smov %s517_s20  ;;  %s671_s20 = smov %s594_s27 }
 0x289   : > { %s672_s21 = smov %s583_s24  ;;  %17 = sbr.rel (!%p15_p9) target bundleno = 3 (0x3), region = 75 }
 0x28e   :  { %360 = vsyncpa [#allocation6], 1 }
 0x28f   :  { %362 = vsyncpa [#allocation6 + $0x1], 1 }

</bundles_post_ra>
